<compile_context>
chip_gen: v7x
topology: tpu7x:2x2x1
jax: 0.10.0
libtpu: 0.0.40
codegen_flags: <defaults>
</compile_context>

<pallas_src>
import jax
import jax.numpy as jnp
from jax.experimental import pallas as pl
from jax.experimental.pallas import tpu as pltpu


# ----------------------------- Pallas kernel --------------------------------

def _fused_cfg_denoiser_kernel(scale_ref, x_ref, bias_ref, cskip_ref,
                               cout_ref, w_ref, o_ref):
    """Fused synthetic denoiser + CFG combine on a (B*C, HW-tile) slab.

    scale_ref : SMEM (1,)          f32   cfg guidance scale
    x_ref     : VMEM (BC, T)       f32   native row-major view of x
    bias_ref  : VMEM (2, BC, 1)    f32   [uncond, cond] pooled biases per row
    cskip_ref : VMEM (BC, 1)       f32   Karras c_skip per row
    cout_ref  : VMEM (BC, 1)       f32   Karras c_out  per row
    w_ref     : VMEM (BC, BC)      f32   kron(I_B, w_mix) block-diagonal mix
    o_ref     : VMEM (BC, T)       f32   guided output
    """
    x = x_ref[...]                                               # (BC, T)

    # Block-diagonal channel mix, shared by uncond & cond branches.
    y = jnp.dot(w_ref[...], x, preferred_element_type=jnp.float32)

    # Two conditioning branches differ only by a per-row bias.
    t_u = jnp.tanh(y + bias_ref[0])                              # (BC, T)
    t_c = jnp.tanh(y + bias_ref[1])                              # (BC, T)

    # u = x*c_skip + c_out*t_u ; c = x*c_skip + c_out*t_c
    # u + (c - u)*scale == x*c_skip + c_out*(t_u + (t_c - t_u)*scale)
    scale = scale_ref[0]
    guided = t_u + (t_c - t_u) * scale
    o_ref[...] = x * cskip_ref[...] + cout_ref[...] * guided


# ------------------------------- wrapper -------------------------------------

def _pick_hw_tiling(hw):
    """Lane tile: multiple of 128, >=2 grid steps when possible (v7x 2 TCs)."""
    if hw % 256 == 0:
        n, tile = 2, hw // 2
        while tile > 4096 and tile % 256 == 0:   # cap lane tile for VMEM
            tile //= 2
            n *= 2
        return n, tile
    return 1, hw                                 # full-extent block


def cfg_denoiser_forward(x, sigma, uncond, cond, cfg_scale, params):
    """Mirrors CFGDenoiser.forward (with the synthetic inner model)."""
    B, C, H, W = x.shape
    HW = H * W
    BC = B * C

    # Native row-major layout: (B, C, H, W) -> (B*C, HW) is a free reshape.
    x_flat = x.reshape(BC, HW).astype(jnp.float32)

    # Block-diagonal mix weight so the whole batch shares one matmul.
    w_bd = jnp.kron(jnp.eye(B, dtype=jnp.float32),
                    params["w_mix"].astype(jnp.float32))          # (BC, BC)

    # Karras preconditioning scalars, broadcast to per-row vectors.
    sigma_f = sigma.astype(jnp.float32)
    sig2 = sigma_f * sigma_f
    c_skip = jnp.repeat(1.0 / (sig2 + 1.0), C).reshape(BC, 1)
    c_out = jnp.repeat(sigma_f * jax.lax.rsqrt(sig2 + 1.0), C).reshape(BC, 1)

    # Pooled conditioning bias for both branches in ONE stacked matmul.
    w_cond = params["w_cond"].astype(jnp.float32)                 # (C, D)
    pooled = jnp.mean(jnp.stack([uncond, cond], 0).astype(jnp.float32), axis=2)
    bias = jnp.einsum("gbd,cd->gbc", pooled, w_cond).reshape(2, BC, 1)

    # Guidance scale as an SMEM scalar (no recompile per scale value).
    scale_arr = jnp.full((1,), cfg_scale, dtype=jnp.float32)

    n_hw, tile_hw = _pick_hw_tiling(HW)

    out_flat = pl.pallas_call(
        _fused_cfg_denoiser_kernel,
        out_shape=jax.ShapeDtypeStruct((BC, HW), jnp.float32),
        grid=(n_hw,),
        in_specs=[
            pl.BlockSpec(memory_space=pltpu.MemorySpace.SMEM),      # cfg_scale
            pl.BlockSpec((BC, tile_hw), lambda i: (0, i)),          # x
            pl.BlockSpec((2, BC, 1), lambda i: (0, 0, 0)),          # biases
            pl.BlockSpec((BC, 1), lambda i: (0, 0)),                # c_skip
            pl.BlockSpec((BC, 1), lambda i: (0, 0)),                # c_out
            pl.BlockSpec((BC, BC), lambda i: (0, 0)),               # w_bd
        ],
        out_specs=pl.BlockSpec((BC, tile_hw), lambda i: (0, i)),
        compiler_params=pltpu.CompilerParams(
            dimension_semantics=("parallel",)),
    )(scale_arr, x_flat, bias, c_skip, c_out, w_bd)

    return out_flat.reshape(B, C, H, W)


# ------------------------- pure-JAX reference ---------------------------------
# Mirrors the original PyTorch module literally (doubled batch, chunk(2), CFG).

def _reference(x, sigma, uncond, cond, cfg_scale, params):
    B, C, H, W = x.shape
    HW = H * W
    x_in = jnp.concatenate([x, x], axis=0).reshape(2 * B, C, HW)
    sigma_in = jnp.concatenate([sigma, sigma], axis=0)
    cond_in = jnp.concatenate([uncond, cond], axis=0)

    sig2 = sigma_in ** 2
    c_skip = (1.0 / (sig2 + 1.0))[:, None, None]
    c_out = (sigma_in * jax.lax.rsqrt(sig2 + 1.0))[:, None, None]
    cond_pool = jnp.mean(cond_in, axis=1)                            # (2B, D)
    bias = jnp.einsum("bd,cd->bc", cond_pool, params["w_cond"])[:, :, None]
    y = jnp.einsum("cd,bdk->bck", params["w_mix"], x_in)
    model_out = x_in * c_skip + c_out * jnp.tanh(y + bias)

    u, c = model_out[:B], model_out[B:]
    return (u + (c - u) * cfg_scale).reshape(B, C, H, W)


# --------------------------------- main ----------------------------------------

if __name__ == "__main__":
    key = jax.random.PRNGKey(0)
    B, C, H, W = 2, 4, 16, 16
    S, D = 8, 32

    kx, ks, ku, kc, kw1, kw2 = jax.random.split(key, 6)
    x = jax.random.normal(kx, (B, C, H, W), dtype=jnp.float32)
    sigma = jax.random.uniform(ks, (B,), dtype=jnp.float32, minval=0.5, maxval=5.0)
    uncond = jax.random.normal(ku, (B, S, D), dtype=jnp.float32)
    cond = jax.random.normal(kc, (B, S, D), dtype=jnp.float32)
    cfg_scale = 7.5

    # Deterministic synthetic inner-model parameters.
    params = {
        "w_mix": jax.random.normal(kw1, (C, C), dtype=jnp.float32) * 0.5,
        "w_cond": jax.random.normal(kw2, (C, D), dtype=jnp.float32) * 0.1,
    }

    out = cfg_denoiser_forward(x, sigma, uncond, cond, cfg_scale, params)
    out = jax.block_until_ready(out)

    ref = jax.block_until_ready(_reference(x, sigma, uncond, cond, cfg_scale, params))
    assert out.shape == (B, C, H, W)
    assert jnp.allclose(out, ref, rtol=1e-3, atol=1e-3), "mismatch vs reference"

    print("KERNEL_OK")
</pallas_src>

<mosaic_0001>
module attributes {stable_mosaic.version = 11 : i64} {
  func.func @_fused_cfg_denoiser_kernel(%arg0: i32, %arg1: memref<1xf32, #tpu.memory_space<smem>>, %arg2: memref<8x128xf32, #tpu.memory_space<vmem>>, %arg3: memref<2x8x1xf32, #tpu.memory_space<vmem>>, %arg4: memref<8x1xf32, #tpu.memory_space<vmem>>, %arg5: memref<8x1xf32, #tpu.memory_space<vmem>>, %arg6: memref<8x8xf32, #tpu.memory_space<vmem>>, %arg7: memref<8x128xf32, #tpu.memory_space<vmem>>) attributes {dimension_semantics = [#tpu.dimension_semantics<parallel>], iteration_bounds = array<i64: 2>, scalar_prefetch = 0 : i64, scratch_operands = 0 : i64, tpu.core_type = #tpu.core_type<tc>, window_params = [{transform_indices = @transform_0, window_bounds = array<i64: 1>}, {transform_indices = @transform_1, window_bounds = array<i64: 8, 128>}, {pipeline_mode = #tpu.pipeline_mode<synchronous>, transform_indices = @transform_2, window_bounds = array<i64: 2, 8, 1>}, {pipeline_mode = #tpu.pipeline_mode<synchronous>, transform_indices = @transform_3, window_bounds = array<i64: 8, 1>}, {pipeline_mode = #tpu.pipeline_mode<synchronous>, transform_indices = @transform_4, window_bounds = array<i64: 8, 1>}, {pipeline_mode = #tpu.pipeline_mode<synchronous>, transform_indices = @transform_5, window_bounds = array<i64: 8, 8>}, {transform_indices = @transform_6, window_bounds = array<i64: 8, 128>}]} {
    %c0 = arith.constant 0 : index
    %c0_0 = arith.constant 0 : index
    %0 = vector.load %arg2[%c0, %c0_0] : memref<8x128xf32, #tpu.memory_space<vmem>>, vector<8x128xf32>
    %c0_1 = arith.constant 0 : index
    %c0_2 = arith.constant 0 : index
    %1 = vector.load %arg6[%c0_1, %c0_2] : memref<8x8xf32, #tpu.memory_space<vmem>>, vector<8x8xf32>
    %cst = arith.constant dense<0.000000e+00> : vector<8x128xf32>
    %2 = tpu.matmul %1, %0, %cst {dimension_numbers = #tpu.dot_dimension_numbers<[1], [0], [0], [1], [0, 0, 1, 1], [], []>} : vector<8x8xf32>, vector<8x128xf32>, vector<8x128xf32> -> vector<8x128xf32>
    %c0_3 = arith.constant 0 : index
    %c0_4 = arith.constant 0 : index
    %c0_5 = arith.constant 0 : index
    %3 = vector.load %arg3[%c0_3, %c0_4, %c0_5] : memref<2x8x1xf32, #tpu.memory_space<vmem>>, vector<1x8x1xf32>
    %4 = vector.shape_cast %3 : vector<1x8x1xf32> to vector<8x1xf32>
    %5 = vector.broadcast %4 : vector<8x1xf32> to vector<8x128xf32>
    %6 = arith.addf %2, %5 : vector<8x128xf32>
    %7 = math.tanh %6 : vector<8x128xf32>
    %c1 = arith.constant 1 : index
    %c0_6 = arith.constant 0 : index
    %c0_7 = arith.constant 0 : index
    %8 = vector.load %arg3[%c1, %c0_6, %c0_7] : memref<2x8x1xf32, #tpu.memory_space<vmem>>, vector<1x8x1xf32>
    %9 = vector.shape_cast %8 : vector<1x8x1xf32> to vector<8x1xf32>
    %10 = vector.broadcast %9 : vector<8x1xf32> to vector<8x128xf32>
    %11 = arith.addf %2, %10 : vector<8x128xf32>
    %12 = math.tanh %11 : vector<8x128xf32>
    %c0_8 = arith.constant 0 : index
    %13 = memref.load %arg1[%c0_8] : memref<1xf32, #tpu.memory_space<smem>>
    %14 = arith.subf %12, %7 : vector<8x128xf32>
    %15 = vector.broadcast %13 : f32 to vector<8x128xf32>
    %16 = arith.mulf %14, %15 : vector<8x128xf32>
    %17 = arith.addf %7, %16 : vector<8x128xf32>
    %c0_9 = arith.constant 0 : index
    %c0_10 = arith.constant 0 : index
    %18 = vector.load %arg4[%c0_9, %c0_10] : memref<8x1xf32, #tpu.memory_space<vmem>>, vector<8x1xf32>
    %19 = vector.broadcast %18 : vector<8x1xf32> to vector<8x128xf32>
    %20 = arith.mulf %0, %19 : vector<8x128xf32>
    %c0_11 = arith.constant 0 : index
    %c0_12 = arith.constant 0 : index
    %21 = vector.load %arg5[%c0_11, %c0_12] : memref<8x1xf32, #tpu.memory_space<vmem>>, vector<8x1xf32>
    %22 = vector.broadcast %21 : vector<8x1xf32> to vector<8x128xf32>
    %23 = arith.mulf %22, %17 : vector<8x128xf32>
    %24 = arith.addf %20, %23 : vector<8x128xf32>
    %c0_13 = arith.constant 0 : index
    %c0_14 = arith.constant 0 : index
    %25 = vector.load %arg7[%c0_13, %c0_14] : memref<8x128xf32, #tpu.memory_space<vmem>>, vector<8x128xf32>
    tpu.vector_store %arg7[%c0_13, %c0_14], %24 {strides = array<i32>} : memref<8x128xf32, #tpu.memory_space<vmem>>, vector<8x128xf32>,
    return
  }
  func.func @transform_0(%arg0: i32) -> i32 {
    %c0_i32 = arith.constant 0 : i32
    %c0_i32_0 = arith.constant 0 : i32
    return %c0_i32 : i32
  }
  func.func @transform_1(%arg0: i32) -> (i32, i32) {
    %c0_i32 = arith.constant 0 : i32
    %c0_i32_0 = arith.constant 0 : i32
    return %c0_i32, %arg0 : i32, i32
  }
  func.func @transform_2(%arg0: i32) -> (i32, i32, i32) {
    %c0_i32 = arith.constant 0 : i32
    %c0_i32_0 = arith.constant 0 : i32
    %c0_i32_1 = arith.constant 0 : i32
    %c0_i32_2 = arith.constant 0 : i32
    return %c0_i32, %c0_i32_0, %c0_i32_1 : i32, i32, i32
  }
  func.func @transform_3(%arg0: i32) -> (i32, i32) {
    %c0_i32 = arith.constant 0 : i32
    %c0_i32_0 = arith.constant 0 : i32
    %c0_i32_1 = arith.constant 0 : i32
    return %c0_i32, %c0_i32_0 : i32, i32
  }
  func.func @transform_4(%arg0: i32) -> (i32, i32) {
    %c0_i32 = arith.constant 0 : i32
    %c0_i32_0 = arith.constant 0 : i32
    %c0_i32_1 = arith.constant 0 : i32
    return %c0_i32, %c0_i32_0 : i32, i32
  }
  func.func @transform_5(%arg0: i32) -> (i32, i32) {
    %c0_i32 = arith.constant 0 : i32
    %c0_i32_0 = arith.constant 0 : i32
    %c0_i32_1 = arith.constant 0 : i32
    return %c0_i32, %c0_i32_0 : i32, i32
  }
  func.func @transform_6(%arg0: i32) -> (i32, i32) {
    %c0_i32 = arith.constant 0 : i32
    %c0_i32_0 = arith.constant 0 : i32
    return %c0_i32, %arg0 : i32, i32
  }
}

</mosaic_0001>

<bundles_post_ra>
// kernel: tpu_custom_call.1
= control target key start
LH: loop header
LB: loop body
LE: loop exit
PB: predicated region body
PF: predicated region fallthrough
CT: control target
= control target key end

     0   :  { %s723_s0 = inlined_call_operand.<no memory space> [shape: f32[1], index: 0, kind: input, shape index: {}]   ;;  %s724_s1 = inlined_call_operand.vmem [shape: f32[8,256], index: 1, kind: input, shape index: {}]   ;;  %s725_s2 = inlined_call_operand.vmem [shape: f32[2,8,1], index: 2, kind: input, shape index: {}]   ;;  %s726_s3 = inlined_call_operand.vmem [shape: f32[8,1], index: 3, kind: input, shape index: {}]   ;;  %s727_s4 = inlined_call_operand.vmem [shape: f32[8,1], index: 4, kind: input, shape index: {}]   ;;  %s728_s5 = inlined_call_operand.vmem [shape: f32[8,8], index: 5, kind: input, shape index: {}]   ;;  %s729_s6 = inlined_call_operand.hbm [shape: f32[8,256], index: 6, kind: output, shape index: {}]  }
   0x1   :  { %11 = sst [smem:[#allocation2]] %s723_s0 }
   0x2   :  { %12 = vsyncpa [#allocation4], 0 }
   0x3   :  { %14 = vsyncpa [#allocation4 + $0x1], 0  ;;  %s608_s23 = smov 0   ;;  %s610_s24 = smov 0  }
   0x4   :  { %s612_s25 = smov 0   ;;  %s614_s26 = smov 0  }
   0x5 LB: > { %s629_s0 = sadd.s32 4294967295, %s564_s26   ;;  %s435_s27 = sadd.s32 4294967294, %s564_s26   ;;  %s564_s26 = sphi %s614_s26, %s735_s26   ;;  %s560_s25 = sphi %s612_s25, %s734_s25   ;;  %s556_s24 = sphi %s610_s24, %s733_s24   ;;  %s552_s23 = sphi %s608_s23, %s732_s23  }
   0x6   : > { %s633_s28 = sadd.s32 1, %s564_s26   ;;  %s158_s29 = sadd.s32 1, %s560_s25 }
   0x7   : > { %s155_s30 = ssub.s32 %s564_s26, %s633_s28  ;;  %p168_p0 = scmp.ne.s32.totalorder %s560_s25, %s556_s24 }
   0x8   : > { %p156_p1 = scmp.eq.s32.totalorder %s155_s30, 0  ;;  %p169_p2 = scmp.eq.s32.totalorder %s629_s0, 1 }
   0x9   : > { %p174_p3 = scmp.ne.s32.totalorder %s556_s24, %s552_s23  ;;  %p175_p4 = scmp.eq.s32.totalorder %s435_s27, 1 }
   0xa   : > { %s644_s7 = scalar_select %p156_p1, %s560_s25, %s158_s29  }
   0xb   : > { %p646_p5 = por %p169_p2, %p168_p0  ;;  %p650_p6 = por %p175_p4, %p174_p3 }
   0xc   : > { %p438_p7 = scmp.ge.s32.totalorder %s564_s26, 1  ;;  %p215_p8 = scmp.lt.s32.totalorder %s564_s26, 3 }
   0xe   : > { %p216_p9 = pnand %p438_p7, %p215_p8 }
   0xf   : > { %p244_p10 = scmp.lt.s32.totalorder (!%p216_p9), %s629_s0, 1  ;;  %v566_v0 = vmov (!%p216_p9), 0.0   ;;  %vm567_vm0 = vmmov (!%p216_p9), 0   ;;  %v324_v1 = vld [vmem:[%s725_s2] sm:$0xff] (!%p216_p9)  ;;  %v568_v3 = vmov (!%p216_p9), 0   ;;  %v442_v4 = vld [vmem:[%s725_s2 + $0x8] sm:$0xff] (!%p216_p9) }
  0x10   : > { %219 = sbr.rel (%p216_p9) target bundleno = 279 (0x117), region = 44  ;;  %449 = vmatprep.subr.mxu0 (!%p216_p9), %v566_v0  ;;  %451 = vmatprep.mubr.msk.f32.mxu0 (!%p216_p9), %vm567_vm0, %v566_v0  ;;  %v346_v2 = vld [vmem:[%s726_s3] sm:$0xff] (!%p216_p9)  ;;  %vm250_vm1 = vcmask (!%p216_p9), 64512   ;;  %s341_s30 = sld [smem:[#allocation2]] (!%p216_p9) }
  0x11   : > { %496 = vset.pattern.permute.xlu0 (!%p216_p9), %v568_v3  ;;  %497 = vset.pattern.permute.xlu1 (!%p216_p9), %v568_v3  ;;  %v249_v5 = vld [vmem:[%s728_s5] sm:$0xff] (!%p216_p9)  ;;  %s241_s10 = sand.u32 (!%p216_p9), 1, %s556_s24   ;;  %s444_s12 = sshll.u32 (!%p216_p9), %s629_s0, 7 }
  0x12   : > { %327 = vperm.xlu0 (!%p216_p9), %496, %v324_v1   ;;  %349 = vperm.xlu1 (!%p216_p9), %497, %v346_v2   ;;  %v353_v6 = vld [vmem:[%s727_s4] sm:$0xff] (!%p216_p9)  ;;  %s439_s11 = sshll.u32 (!%p216_p9), %s241_s10, 3  ;;  %s681_s17 = scalar_lea.hbm (!%p216_p9), %s729_s6, %s444_s12 }
  0x13   : > { %s243_s13 = scalar_lea.vmem (!%p216_p9), [#allocation3], %s439_s11  ;;  %s363_s18 = scalar_lea.sflag (!%p216_p9), [#allocation4], %s241_s10 }
  0x16   : > { %336 = vperm.xlu0 (!%p216_p9), %496, %v442_v4   ;;  %356 = vperm.xlu1 (!%p216_p9), %497, %v353_v6   ;;  %v343_v17 = vstv (!%p216_p9), %s341_s30 }
  0x17   : > { %s245_s14 = scalar_select %p244_p10, %s629_s0, 1 }
  0x18   : > { %s569_s0 = smov [#allocation3]  }
  0x19   : > { %s440_s15 = sshll.u32 %s245_s14, 3  ;;  %s376_s14 = sshll.u32 %s243_s13, 4  ;;  %s683_s14 = int_to_ptr.vmem [resolvable:$true] %s376_s14 }
  0x1a   : > { %s247_s20 = scalar_lea.vmem %s724_s1, %s440_s15  ;;  %s502_s19 = scalar_lea.vmem %s683_s14, 128 }
  0x1b   : > { %v248_v7 = vld [vmem:[%s247_s20] sm:$0xff]  ;;  %p503_p11 = scmp.ne.s32.totalorder %s683_s14, %s502_s19  ;;  %s506_s20 = sshll.u32 %s569_s0, 4  ;;  %s507_s20 = int_to_ptr.vmem [resolvable:$false] %s506_s20 }
  0x1c   : > { %450 = vmatpush3.msra.mxu0 %v248_v7  ;;  %s508_s21 = scalar_lea.vmem %s507_s20, 256  ;;  %p509_p0 = scmp.lt.s32.totalorder %s683_s14, %s507_s20 }
  0x1d   : > { %452 = vmatmul.mubr.msk.f32.vlgmr.msra.gmra.mrb[0].mxu0 %vm250_vm1, %v249_v5  ;;  %p504_p12 = pnand %p503_p11, %p646_p5  ;;  %p510_p1 = scmp.lt.s32.totalorder %s508_s21, %s502_s19 }
  0x1f   : > { %p505_p13 = pneg %p504_p12  ;;  %p511_p2 = por %p510_p1, %p509_p0 }
  0x21   : > { %p512_p3 = pnand %p511_p2, %p505_p13 }
  0x91   : > { %v328_v8 = vpop.permute.xlu0 %327  ;;  %v350_v16 = vpop.permute.xlu1 %349 }
  0x92   : > { %v352_v22 = vmul.f32 %v350_v16, %v248_v7 }
  0x95   : > { %v337_v9 = vpop.permute.xlu0 %336  ;;  %v357_v21 = vpop.permute.xlu1 %356 }
  0xf0   : > { %v320_v10 = vpop.f32.mrb[0].mxu0 }
  0xf1   : > { %v330_v11 = vadd.f32 %v328_v8, %v320_v10  ;;  %v339_v12 = vadd.f32 %v337_v9, %v320_v10  ;;  %v453_v13 = vpop.f32.mrb[1].mxu0 }
  0xf3   : > { %498 = vtanh.f32 %v330_v11 }
  0xf4   : > { %500 = vtanh.f32 %v339_v12 }
  0xfd   : > { %v499_v14 = vpop.eup %498 }
  0xfe   : > { %v501_v15 = vpop.eup %500 }
  0xff   : > { %v342_v18 = vsub.f32 %v501_v15, %v499_v14 }
 0x101   : > { %v344_v19 = vmul.f32 %v343_v17, %v342_v18 }
 0x103   : > { %v345_v20 = vadd.f32 %v499_v14, %v344_v19 }
 0x105   : > { %v359_v23 = vmul.f32 %v357_v21, %v345_v20 }
 0x107   : > { %v360_v24 = vadd.f32 %v359_v23, %v352_v22 }
 0x109   : > { %361 = vst [vmem:[%s243_s13] sm:$0xff] %v360_v24 }
 0x10a   : > { %515 = shalt.err (!%p512_p3)
}
 0x10b   : > { %s516_s22 = scalar_lea.hbm %s681_s17, 128  ;;  %s520_s30 = scalar_lea.hbm %s729_s6, 256 }
 0x10c   : > { %p517_p4 = scmp.ne.s32.totalorder %s681_s17, %s516_s22  ;;  %p521_p9 = scmp.lt.u32.totalorder %s681_s17, %s729_s6 }
 0x10d   : > { %p522_p10 = scmp.lt.u32.totalorder %s520_s30, %s516_s22  ;;  %p524_p12 = scmp.lt.u32.totalorder %s516_s22, %s681_s17 }
 0x10e   : > { %p518_p7 = pnand %p517_p4, %p646_p5 }
 0x10f   : > { %p523_p11 = por %p522_p10, %p521_p9 }
 0x110   : > { %p519_p8 = pneg %p518_p7 }
 0x111   : > { %p525_p13 = por %p524_p12, %p523_p11 }
 0x113   : > { %p526_p0 = pnand %p525_p13, %p519_p8 }
 0x115   : > { %529 = shalt.err (!%p526_p0)
}
 0x116   : > { %454 = dma.vmem_to_hbm [thread:$0]  (%p646_p5), %s683_s14, 128, %s681_s17, %s363_s18  }
 0x117 PF: > { %p460_p1 = scmp.ge.s32.totalorder %s564_s26, 2  ;;  %s388_s12 = sand.u32 1, %s552_s23  }
 0x118   : > { %s389_s13 = scalar_lea.sflag [#allocation4], %s388_s12 }
 0x119   : > { %p457_p2 = pnand %p460_p1, %p650_p6 }
 0x11b   : > { %547 = dma.done.wait (!%p457_p2), %s389_s13, 128  }
 0x11c   : > { %549 = vsyncadd (!%p457_p2), %s389_s13, 4294967168  ;;  %p17_p3 = scmp.ge.s32.totalorder %s633_s28, 4   ;;  %s732_s23 = smov %s556_s24 }
 0x11d   : > { %s733_s24 = smov %s560_s25  ;;  %s734_s25 = smov %s644_s7 }
 0x11e   : > { %s735_s26 = smov %s633_s28  ;;  %19 = sbr.rel (!%p17_p3) target bundleno = 5 (0x5), region = 80 }
 0x125   :  { %394 = vsyncpa [#allocation4], 1 }
 0x126   :  { %396 = vsyncpa [#allocation4 + $0x1], 1 }

</bundles_post_ra>
